<compile_context>
chip_gen: v7x
topology: tpu7x:2x2x1
jax: 0.10.0
libtpu: 0.0.40
codegen_flags: <defaults>
</compile_context>

<pallas_src>
import jax
import jax.numpy as jnp
from jax.experimental import pallas as pl
from jax.experimental.pallas import tpu as pltpu


_LANE_TILE = 4096                 # lane-axis tile, multiple of 128
_BLOCK_BYTES_TARGET = 4 << 20     # ~4 MiB per activation block
_VMEM_LIMIT_BYTES = 48 << 20      # < 64 MiB physical VMEM on v7x


def _sublane_align(dtype):
    """Sublane packing factor: 8 for 4-byte, 16 for 2-byte, 32 for 1-byte dtypes."""
    return max(8, 32 // jnp.dtype(dtype).itemsize)


def _actnorm_kernel(x_ref, scale_ref, bias_ref, o_ref):
    # x_ref / o_ref : (R, L) activation tile.
    # scale_ref/bias_ref broadcast against it: (R, 1) per-sublane params on the
    # NCHW path, or (1, L) per-lane params on the 2-D squeeze path.
    x = x_ref[...].astype(jnp.float32)
    o_ref[...] = (x * scale_ref[...] + bias_ref[...]).astype(o_ref.dtype)


def _affine_rows(x2, scale_rows, bias_rows, donate_x=False):
    """x2: (R, L) with L lane-dense; scale_rows/bias_rows: (R, 1) f32."""
    R, L = x2.shape
    align = _sublane_align(x2.dtype)
    # Fixed, aligned lane tile (full extent when the array is small).
    lane_blk = _LANE_TILE if L >= _LANE_TILE else L
    # Row tile targeting ~4 MiB blocks, multiple of the sublane packing factor.
    elems_target = _BLOCK_BYTES_TARGET // jnp.dtype(x2.dtype).itemsize
    rows_target = max(align, (elems_target // max(lane_blk, 1)) // align * align)
    row_blk = R if R <= rows_target else rows_target
    grid = (pl.cdiv(R, row_blk), pl.cdiv(L, lane_blk))

    return pl.pallas_call(
        _actnorm_kernel,
        out_shape=jax.ShapeDtypeStruct((R, L), x2.dtype),
        grid_spec=pl.GridSpec(
            grid=grid,
            in_specs=[
                pl.BlockSpec((row_blk, lane_blk), lambda r, l: (r, l)),
                pl.BlockSpec((row_blk, 1), lambda r, l: (r, 0)),
                pl.BlockSpec((row_blk, 1), lambda r, l: (r, 0)),
            ],
            out_specs=pl.BlockSpec((row_blk, lane_blk), lambda r, l: (r, l)),
        ),
        compiler_params=pltpu.CompilerParams(
            dimension_semantics=("parallel", "parallel"),
            vmem_limit_bytes=_VMEM_LIMIT_BYTES,
        ),
        input_output_aliases=({0: 0} if donate_x else {}),
    )(x2, scale_rows, bias_rows)


def _affine_lanes(x2, scale_lane, bias_lane):
    """2-D squeeze path: x2 (N, C) with C on lanes; scale/bias: (1, C) f32."""
    R, C = x2.shape
    lane_blk = 2048 if C >= 2048 else C           # multiple of 128 or full extent
    row_blk = R if R <= 256 else 256
    grid = (pl.cdiv(R, row_blk), pl.cdiv(C, lane_blk))

    return pl.pallas_call(
        _actnorm_kernel,
        out_shape=jax.ShapeDtypeStruct((R, C), x2.dtype),
        grid_spec=pl.GridSpec(
            grid=grid,
            in_specs=[
                pl.BlockSpec((row_blk, lane_blk), lambda r, l: (r, l)),
                pl.BlockSpec((1, lane_blk), lambda r, l: (0, l)),
                pl.BlockSpec((1, lane_blk), lambda r, l: (0, l)),
            ],
            out_specs=pl.BlockSpec((row_blk, lane_blk), lambda r, l: (r, l)),
        ),
        compiler_params=pltpu.CompilerParams(
            dimension_semantics=("parallel", "parallel"),
            vmem_limit_bytes=_VMEM_LIMIT_BYTES,
        ),
    )(x2, scale_lane, bias_lane)


def actnorm_forward(x, loc, scale, logdet=False, donate_x=False):
    """ActNorm forward: h = scale * (x + loc).

    Args:
      x:     (N, C, H, W) NCHW input, or (N, C) (PyTorch squeeze path).
      loc:   (1, C, 1, 1) parameter.
      scale: (1, C, 1, 1) parameter.
      logdet: also return per-sample logdet of shape (N,).
      donate_x: alias the input buffer to the output (caller donates x).
    """
    scale_f32 = scale.reshape(-1).astype(jnp.float32)                # (C,)
    bias_f32 = scale_f32 * loc.reshape(-1).astype(jnp.float32)       # scale*loc
    C = scale_f32.shape[0]

    if x.ndim == 2:
        # matches the PyTorch `input[:, :, None, None]` path; keep C lane-dense.
        N = x.shape[0]
        H = W = 1
        h = _affine_lanes(x, scale_f32.reshape(1, C), bias_f32.reshape(1, C))
    else:
        N, Cx, H, W = x.shape
        assert Cx == C
        HW = H * W
        x2 = x.reshape(N * C, HW)                                     # free reshape
        scale_rows = jnp.tile(scale_f32, (N,)).reshape(N * C, 1)
        bias_rows = jnp.tile(bias_f32, (N,)).reshape(N * C, 1)
        h = _affine_rows(x2, scale_rows, bias_rows,
                         donate_x=donate_x).reshape(N, C, H, W)

    if logdet:
        # tiny per-channel reduction; plain-JAX glue is fine here
        ld = (H * W) * jnp.sum(jnp.log(jnp.abs(scale_f32)))
        ld = ld * jnp.ones((N,), dtype=jnp.float32)
        return h, ld
    return h


# ----------------------------------------------------------------------------
# Minimal NLayerDiscriminatorV2(use_actnorm=True, blur_ds=False) forward in JAX.
# Convs / LeakyReLU go to XLA; ActNorm layers use the Pallas kernel above.
# ----------------------------------------------------------------------------

def _leaky_relu(x, slope=0.2):
    return jnp.where(x >= 0, x, slope * x)


def _conv2d_nchw(x, w, b, stride, padding=1):
    out = jax.lax.conv_general_dilated(
        x, w, window_strides=(stride, stride),
        padding=((padding, padding), (padding, padding)),
        dimension_numbers=("NCHW", "OIHW", "NCHW"))
    return out + b.reshape(1, -1, 1, 1)


def build_discriminator_params(key, input_nc=3, ndf=8, n_layers=2, kw=3, max_mult=8):
    """Parameters mirroring NLayerDiscriminatorV2(use_actnorm=True, blur_ds=False)."""
    layers = []
    kit = iter(jax.random.split(key, 8 * n_layers + 16))

    def add_conv(cin, cout, stride):
        w = 0.02 * jax.random.normal(next(kit), (cout, cin, kw, kw), jnp.float32)
        layers.append(dict(kind="conv", w=w,
                           b=jnp.zeros((cout,), jnp.float32), stride=stride))

    def add_actnorm(c):
        k1, k2 = jax.random.split(next(kit))
        layers.append(dict(
            kind="actnorm",
            loc=0.05 * jax.random.normal(k1, (1, c, 1, 1), jnp.float32),
            scale=1.0 + 0.05 * jax.random.normal(k2, (1, c, 1, 1), jnp.float32)))

    def add_lrelu():
        layers.append(dict(kind="lrelu"))

    add_conv(input_nc, ndf, 1); add_lrelu()
    add_conv(ndf, ndf, 2); add_lrelu()
    nf_mult = 1
    for n in range(1, n_layers):
        nf_prev, nf_mult = nf_mult, min(2 ** n, max_mult)
        add_conv(ndf * nf_prev, ndf * nf_mult, 1); add_actnorm(ndf * nf_mult); add_lrelu()
        add_conv(ndf * nf_mult, ndf * nf_mult, 2); add_actnorm(ndf * nf_mult); add_lrelu()
    nf_prev, nf_mult = nf_mult, min(2 ** n_layers, max_mult)
    add_conv(ndf * nf_prev, ndf * nf_mult, 1); add_actnorm(ndf * nf_mult); add_lrelu()
    add_conv(ndf * nf_mult, ndf * nf_mult, 2); add_actnorm(ndf * nf_mult); add_lrelu()

    final_w = 0.02 * jax.random.normal(next(kit), (1, ndf * nf_mult, kw, kw), jnp.float32)
    return dict(layers=layers, final_w=final_w, final_b=jnp.zeros((1,), jnp.float32))


def discriminator_forward(params, x, actnorm_fn):
    h = x
    for layer in params["layers"]:
        kind = layer["kind"]
        if kind == "conv":
            h = _conv2d_nchw(h, layer["w"], layer["b"], layer["stride"])
        elif kind == "actnorm":
            h = actnorm_fn(h, layer["loc"], layer["scale"])
        else:
            h = _leaky_relu(h)
    return _conv2d_nchw(h, params["final_w"], params["final_b"], 1)


def _actnorm_reference(x, loc, scale):
    if x.ndim == 2:
        return (scale * (x[:, :, None, None] + loc))[:, :, 0, 0]
    return scale * (x + loc)


if __name__ == "__main__":
    key = jax.random.PRNGKey(0)
    kx, kl, ks, kx2, kx3, kx4, kd, kdx = jax.random.split(key, 8)

    # --- primary: small shapes consistent with the module (batch=2, C=4, 16x16) ---
    N, C, H, W = 2, 4, 16, 16
    x = jax.random.normal(kx, (N, C, H, W), dtype=jnp.float32)
    loc = 0.1 * jax.random.normal(kl, (1, C, 1, 1), dtype=jnp.float32)
    scale = 1.0 + 0.1 * jax.random.normal(ks, (1, C, 1, 1), dtype=jnp.float32)

    h = jax.block_until_ready(actnorm_forward(x, loc, scale))
    assert h.shape == (N, C, H, W)
    assert jnp.allclose(h, _actnorm_reference(x, loc, scale), atol=1e-5, rtol=1e-5)

    # --- logdet path ---
    h2, ld = actnorm_forward(x, loc, scale, logdet=True)
    jax.block_until_ready((h2, ld))
    ld_ref = (H * W) * jnp.sum(jnp.log(jnp.abs(scale))) * jnp.ones((N,))
    assert jnp.allclose(ld, ld_ref, atol=1e-5, rtol=1e-5)

    # --- 2-D squeeze path (input[:, :, None, None]) -> lane-dense C-on-lanes ---
    x2d = jax.random.normal(kx2, (N, C), dtype=jnp.float32)
    h2d = jax.block_until_ready(actnorm_forward(x2d, loc, scale))
    assert h2d.shape == (N, C)
    assert jnp.allclose(h2d, _actnorm_reference(x2d, loc, scale), atol=1e-5, rtol=1e-5)

    # --- ragged lane edge: HW = 72*72 = 5184 (> 4096 lane tile, not /128) ---
    N2, C2, H2, W2 = 2, 96, 72, 72
    xr = jax.random.normal(kx3, (N2, C2, H2, W2), dtype=jnp.float32)
    locr = jnp.linspace(-0.2, 0.2, C2).reshape(1, C2, 1, 1).astype(jnp.float32)
    scaler = jnp.linspace(0.8, 1.2, C2).reshape(1, C2, 1, 1).astype(jnp.float32)
    hr = jax.block_until_ready(actnorm_forward(xr, locr, scaler))
    assert jnp.allclose(hr, _actnorm_reference(xr, locr, scaler), atol=1e-5, rtol=1e-5)

    # --- bf16 activations (dtype-aware sublane packing) ---
    xb = jax.random.normal(kx4, (2, 16, 40, 40), dtype=jnp.bfloat16)
    locb = 0.1 * jax.random.normal(kl, (1, 16, 1, 1), dtype=jnp.float32)
    scaleb = 1.0 + 0.1 * jax.random.normal(ks, (1, 16, 1, 1), dtype=jnp.float32)
    hb = jax.block_until_ready(actnorm_forward(xb, locb, scaleb))
    refb = _actnorm_reference(xb.astype(jnp.float32), locb, scaleb)
    assert hb.dtype == jnp.bfloat16
    assert jnp.allclose(hb.astype(jnp.float32), refb, atol=2e-2, rtol=2e-2)

    # --- full NLayerDiscriminatorV2 forward (Pallas ActNorm vs. jnp ActNorm) ---
    params = build_discriminator_params(kd, input_nc=3, ndf=8, n_layers=2)
    xin = jax.random.normal(kdx, (2, 3, 32, 32), dtype=jnp.float32)
    out_pallas = jax.block_until_ready(
        discriminator_forward(params, xin, actnorm_forward))
    out_ref = discriminator_forward(params, xin, _actnorm_reference)
    assert out_pallas.shape == (2, 1, 4, 4)
    assert jnp.allclose(out_pallas, out_ref, atol=1e-4, rtol=1e-4)

    print("KERNEL_OK")
</pallas_src>

<mosaic_0001>
module attributes {stable_mosaic.version = 11 : i64} {
  func.func @_actnorm_kernel(%arg0: i32, %arg1: i32, %arg2: memref<8x256xf32, #tpu.memory_space<vmem>>, %arg3: memref<8x1xf32, #tpu.memory_space<vmem>>, %arg4: memref<8x1xf32, #tpu.memory_space<vmem>>, %arg5: memref<8x256xf32, #tpu.memory_space<vmem>>) attributes {dimension_semantics = [#tpu.dimension_semantics<parallel>, #tpu.dimension_semantics<parallel>], iteration_bounds = array<i64: 1, 1>, scalar_prefetch = 0 : i64, scratch_operands = 0 : i64, tpu.core_type = #tpu.core_type<tc>, window_params = [{transform_indices = @transform_0, window_bounds = array<i64: 8, 256>}, {transform_indices = @transform_1, window_bounds = array<i64: 8, 1>}, {transform_indices = @transform_2, window_bounds = array<i64: 8, 1>}, {transform_indices = @transform_3, window_bounds = array<i64: 8, 256>}]} {
    %c0 = arith.constant 0 : index
    %c0_0 = arith.constant 0 : index
    %0 = vector.load %arg2[%c0, %c0_0] : memref<8x256xf32, #tpu.memory_space<vmem>>, vector<8x256xf32>
    %c0_1 = arith.constant 0 : index
    %c0_2 = arith.constant 0 : index
    %1 = vector.load %arg3[%c0_1, %c0_2] : memref<8x1xf32, #tpu.memory_space<vmem>>, vector<8x1xf32>
    %2 = vector.broadcast %1 : vector<8x1xf32> to vector<8x256xf32>
    %3 = arith.mulf %0, %2 : vector<8x256xf32>
    %c0_3 = arith.constant 0 : index
    %c0_4 = arith.constant 0 : index
    %4 = vector.load %arg4[%c0_3, %c0_4] : memref<8x1xf32, #tpu.memory_space<vmem>>, vector<8x1xf32>
    %5 = vector.broadcast %4 : vector<8x1xf32> to vector<8x256xf32>
    %6 = arith.addf %3, %5 : vector<8x256xf32>
    %c0_5 = arith.constant 0 : index
    %c0_6 = arith.constant 0 : index
    %7 = vector.load %arg5[%c0_5, %c0_6] : memref<8x256xf32, #tpu.memory_space<vmem>>, vector<8x256xf32>
    tpu.vector_store %arg5[%c0_5, %c0_6], %6 {strides = array<i32>} : memref<8x256xf32, #tpu.memory_space<vmem>>, vector<8x256xf32>,
    return
  }
  func.func @transform_0(%arg0: i32, %arg1: i32) -> (i32, i32) {
    %c0_i32 = arith.constant 0 : i32
    return %arg0, %arg1 : i32, i32
  }
  func.func @transform_1(%arg0: i32, %arg1: i32) -> (i32, i32) {
    %c0_i32 = arith.constant 0 : i32
    %c0_i32_0 = arith.constant 0 : i32
    return %arg0, %c0_i32 : i32, i32
  }
  func.func @transform_2(%arg0: i32, %arg1: i32) -> (i32, i32) {
    %c0_i32 = arith.constant 0 : i32
    %c0_i32_0 = arith.constant 0 : i32
    return %arg0, %c0_i32 : i32, i32
  }
  func.func @transform_3(%arg0: i32, %arg1: i32) -> (i32, i32) {
    %c0_i32 = arith.constant 0 : i32
    return %arg0, %arg1 : i32, i32
  }
}

</mosaic_0001>

<bundles_post_ra>
// kernel: tpu_custom_call.1
= control target key start
LH: loop header
LB: loop body
LE: loop exit
PB: predicated region body
PF: predicated region fallthrough
CT: control target
= control target key end

     0   :  { %s122_s0 = inlined_call_operand.vmem [shape: f32[8,256], index: 0, kind: input, shape index: {}]   ;;  %s123_s1 = inlined_call_operand.vmem [shape: f32[8,1], index: 1, kind: input, shape index: {}]   ;;  %s124_s2 = inlined_call_operand.vmem [shape: f32[8,1], index: 2, kind: input, shape index: {}]   ;;  %s125_s3 = inlined_call_operand.hbm [shape: f32[8,256], index: 3, kind: output, shape index: {}]  }
   0x1   :  { %v17_v0 = vld [vmem:[%s123_s1] sm:$0xff] }
   0x2   :  { %8 = vsyncpa [#allocation3], 0  ;;  %v76_v1 = vmov 0   ;;  %v25_v2 = vld [vmem:[%s124_s2] sm:$0xff]  ;;  %v16_v5 = vld [vmem:[%s122_s0 + $0x8] sm:$0xff]  ;;  %s77_s20 = smov [#allocation2]  }
   0x3   :  { %51 = vset.pattern.permute.xlu0 %v76_v1  ;;  %v15_v4 = vld [vmem:[%s122_s0] sm:$0xff]  ;;  %s41_s1 = sshll.u32 %s77_s20, 4  ;;  %s42_s1 = int_to_ptr.vmem [resolvable:$true] %s41_s1 }
   0x4   :  { %20 = vperm.xlu0 %51, %v17_v0   ;;  %s52_s2 = scalar_lea.vmem %s42_s1, 256  ;;  %p57_p1 = scmp.lt.s32.totalorder %s42_s1, %s42_s1 }
   0x5   :  { %p53_p0 = scmp.ne.s32.totalorder %s42_s1, %s52_s2  ;;  %p58_p2 = scmp.lt.s32.totalorder %s52_s2, %s52_s2 }
   0x7   :  { %p59_p3 = por %p58_p2, %p57_p1 }
   0x8   :  { %28 = vperm.xlu0 %51, %v25_v2  }
   0x9   :  { %p60_p4 = pnand %p59_p3, %p53_p0 }
  0x83   :  { %v21_v3 = vpop.permute.xlu0 %20 }
  0x84   :  { %v23_v6 = vmul.f32 %v21_v3, %v15_v4  ;;  %v24_v7 = vmul.f32 %v21_v3, %v16_v5 }
  0x87   :  { %v29_v8 = vpop.permute.xlu0 %28 }
  0x88   :  { %v31_v9 = vadd.f32 %v29_v8, %v23_v6  ;;  %v32_v10 = vadd.f32 %v29_v8, %v24_v7 }
  0x8a   :  { %33 = vst [vmem:[#allocation2] sm:$0xff] %v31_v9  ;;  %34 = vst [vmem:[#allocation2 + $0x8] sm:$0xff] %v32_v10 }
  0x8b   :  { %63 = shalt.err (!%p60_p4)
}
  0x8c   :  { %s64_s0 = scalar_lea.hbm %s125_s3, 256 }
  0x8d   :  { %p65_p5 = scmp.ne.s32.totalorder %s125_s3, %s64_s0  ;;  %p68_p6 = scmp.lt.u32.totalorder %s64_s0, %s125_s3 }
  0x8f   :  { %p70_p7 = pnand %p68_p6, %p65_p5 }
  0x91   :  { %73 = shalt.err (!%p70_p7)
}
  0x92   :  { %44 = dma.vmem_to_hbm [thread:$0]  %s42_s1, 256, %s125_s3, [#allocation3]  }
  0x93   :  { %74 = dma.done.wait [#allocation3], 256  }
  0x94   :  { %75 = vsyncadd [#allocation3], 4294967040 }
  0x95   :  { %48 = vsyncpa [#allocation3], 1 }

</bundles_post_ra>
